<compile_context>
chip_gen: v7x
topology: tpu7x:2x2x1
jax: 0.10.0
libtpu: 0.0.40
codegen_flags: <defaults>
</compile_context>

<pallas_src>
import numpy as np
import jax
import jax.numpy as jnp
from jax import lax
from jax.experimental import pallas as pl
from jax.experimental.pallas import tpu as pltpu

# ----------------------------- scaled-down config ---------------------------
SR = 8000
N_FFT = 256
WIN_LENGTH = 256
HOP = 64
N_MELS = 32
FMIN = 0.0
FMAX_AUG_RANGE = 1
FMAX = SR // 2 - FMAX_AUG_RANGE // 2          # 4000 (module default fmax)
NB = N_FFT // 2                               # 128 kept rfft bins (mel weight == 0 for bin 128)
PREEMPH = 0.97
TM_MAX = 256                                  # frame tile (one 256-wide MXU pass)


def _round_up(a, b):
    return (a + b - 1) // b * b


# ----------------------------- parameter builders ----------------------------
def hann_periodic(win_length):
    n = np.arange(win_length, dtype=np.float64)
    return 0.5 * (1.0 - np.cos(2.0 * np.pi * n / win_length))


def kaldi_mel_banks(num_bins, n_fft, sample_freq, low_freq, high_freq):
    """torchaudio.compliance.kaldi.get_mel_banks (vtln_warp_factor == 1)."""
    num_fft_bins = n_fft // 2
    mel = lambda f: 1127.0 * np.log(1.0 + np.asarray(f, dtype=np.float64) / 700.0)
    fft_bin_width = sample_freq / n_fft
    mel_low = mel(low_freq)
    mel_high = mel(high_freq)
    mel_delta = (mel_high - mel_low) / (num_bins + 1)
    b = np.arange(num_bins, dtype=np.float64)[:, None]
    left = mel_low + b * mel_delta
    center = mel_low + (b + 1.0) * mel_delta
    right = mel_low + (b + 2.0) * mel_delta
    m = mel(fft_bin_width * np.arange(num_fft_bins, dtype=np.float64))[None, :]
    up = (m - left) / (center - left)
    down = (right - m) / (right - center)
    return np.maximum(0.0, np.minimum(up, down))     # (num_bins, n_fft//2)


def build_constants():
    """Window-folded fused DFT matrix (real | imag on lanes, bf16) and Kaldi mel bank (f32).

    The module pads the mel bank with a zero column for the Nyquist bin, so dropping
    rfft bin 128 here is exact (kaldi_mel_banks only has n_fft//2 columns)."""
    window = hann_periodic(WIN_LENGTH)                        # (n_fft,)
    n = np.arange(N_FFT, dtype=np.float64)[:, None]
    k = np.arange(NB, dtype=np.float64)[None, :]
    ang = 2.0 * np.pi * n * k / N_FFT
    dft_fused = np.concatenate(
        [window[:, None] * np.cos(ang), -window[:, None] * np.sin(ang)], axis=1)
    fb = kaldi_mel_banks(N_MELS, N_FFT, SR, FMIN, FMAX)       # (n_mels, NB)
    return (jnp.asarray(dft_fused, dtype=jnp.bfloat16),       # (n_fft, 2*NB) bf16 MXU operand
            jnp.asarray(fb, dtype=jnp.float32))               # (n_mels, NB) f32


# ----------------------------- Pallas kernel ---------------------------------
def mel_kernel(frames_ref, dft_ref, fb_ref, out_ref):
    nb = fb_ref.shape[1]
    # Windowed DFT as one bf16 MXU matmul with f32 accumulation; the Hann window is
    # folded into dft_ref and real/imag parts are fused along the lane axis.
    ri = jnp.dot(frames_ref[...], dft_ref[...],
                 preferred_element_type=jnp.float32)          # (tm, 2*nb) f32
    re = ri[:, :nb]                                           # 128-aligned lane slices
    im = ri[:, nb:]
    power = re * re + im * im                                 # (tm, nb) f32
    # (n_mels, nb) x (tm, nb) contracted over the bin axis -> (n_mels, tm):
    # frames land on the lane axis -> lane-dense stores, no wrapper transpose.
    # Kept in f32 (log() turns relative error of small mel energies into abs error).
    mel = lax.dot_general(fb_ref[...], power,
                          dimension_numbers=(((1,), (1,)), ((), ())),
                          preferred_element_type=jnp.float32)
    out_ref[...] = jnp.log(jnp.maximum(mel, 1e-7))


def mel_spectrogram(frames_bf16, dft_fused, fb, tm):
    B, n_frames_pad, n_fft = frames_bf16.shape
    two_nb = dft_fused.shape[1]
    n_mels, nb = fb.shape
    assert n_frames_pad % tm == 0
    return pl.pallas_call(
        mel_kernel,
        out_shape=jax.ShapeDtypeStruct((B, n_mels, n_frames_pad), jnp.float32),
        grid_spec=pltpu.PrefetchScalarGridSpec(
            num_scalar_prefetch=0,
            grid=(B, n_frames_pad // tm),
            in_specs=[
                pl.BlockSpec((None, tm, n_fft), lambda b, i: (b, i, 0)),
                # constant index_map: Mosaic skips the re-fetch after step 0
                pl.BlockSpec((n_fft, two_nb), lambda b, i: (0, 0)),
                pl.BlockSpec((n_mels, nb), lambda b, i: (0, 0)),
            ],
            out_specs=pl.BlockSpec((None, n_mels, tm), lambda b, i: (b, 0, i)),
        ),
        compiler_params=pltpu.CompilerParams(
            dimension_semantics=("parallel", "parallel")),
    )(frames_bf16, dft_fused, fb)


# ----------------------------- forward (glue) --------------------------------
def frame_signal(xp, n_fft, hop, n_frames_pad):
    """torch.stft(center=True) framing: reflect pad n_fft//2, hop-strided frames.

    The 1-D signal is zero right-padded (a few hundred samples) so n_frames_pad
    frames come out directly; the 4x-expanded frames array is never re-padded.
    Built from n_fft//hop contiguous reshaped slices (no gather kernel)."""
    B = xp.shape[0]
    pad = n_fft // 2
    xpad = jnp.pad(xp, ((0, 0), (pad, pad)), mode="reflect")
    need = (n_frames_pad - 1) * hop + n_fft
    if need > xpad.shape[1]:
        xpad = jnp.pad(xpad, ((0, 0), (0, need - xpad.shape[1])))
    assert n_fft % hop == 0
    pieces = [
        xpad[:, j * hop: j * hop + n_frames_pad * hop].reshape(B, n_frames_pad, hop)
        for j in range(n_fft // hop)
    ]
    return jnp.concatenate(pieces, axis=2)            # (B, n_frames_pad, n_fft)


def p_augment_mel_stft_forward(x, dft_fused, fb):
    B = x.shape[0]
    # Preemphasis as plain jnp (conv1d with kernel [[[-0.97, 1]]]); XLA fuses it.
    xp = x[:, 1:] - PREEMPH * x[:, :-1]               # (B, T-1) f32
    T1 = xp.shape[1]
    n_frames = 1 + (T1 + 2 * (N_FFT // 2) - N_FFT) // HOP
    tm = min(TM_MAX, _round_up(n_frames, 8))
    # v7x has 2 TensorCores: keep >= 2 grid steps on a parallel axis if B == 1.
    if B == 1 and _round_up(n_frames, 128) // 128 >= 2:
        tm = min(tm, 128)
    n_frames_pad = _round_up(n_frames, tm)
    frames = frame_signal(xp, N_FFT, HOP, n_frames_pad)        # (B, n_frames_pad, n_fft)
    frames = frames.astype(jnp.bfloat16)                       # halve frames HBM traffic
    out = mel_spectrogram(frames, dft_fused, fb, tm)           # (B, n_mels, n_frames_pad)
    out = out[:, :, :n_frames]                                 # drop padded frames
    return out[:, None, :, :]                                  # stack over len(n_fft) == 1


# ----------------------------- numpy references ------------------------------
def reference_forward(x_np):
    """Ideal fp64 pipeline (all 129 rfft bins, zero-padded mel-bank column)."""
    x = x_np.astype(np.float64)
    xp = x[:, 1:] - PREEMPH * x[:, :-1]
    pad = N_FFT // 2
    xpad = np.pad(xp, ((0, 0), (pad, pad)), mode="reflect")
    n_frames = 1 + (xpad.shape[1] - N_FFT) // HOP
    idx = np.arange(n_frames)[:, None] * HOP + np.arange(N_FFT)[None, :]
    frames = xpad[:, idx]                                     # (B, n_frames, n_fft)
    window = hann_periodic(WIN_LENGTH)
    fw = frames * window[None, None, :]
    n = np.arange(N_FFT, dtype=np.float64)[:, None]
    k = np.arange(N_FFT // 2 + 1, dtype=np.float64)[None, :]  # all 129 rfft bins
    ang = 2.0 * np.pi * n * k / N_FFT
    power = (fw @ np.cos(ang)) ** 2 + (fw @ (-np.sin(ang))) ** 2
    fb = kaldi_mel_banks(N_MELS, N_FFT, SR, FMIN, FMAX)       # (n_mels, 128)
    fb_pad = np.concatenate([fb, np.zeros((N_MELS, 1))], axis=1)  # module's zero pad col
    mel = power @ fb_pad.T                                    # (B, n_frames, n_mels)
    return np.log(np.maximum(mel, 1e-7)).transpose(0, 2, 1)[:, None, :, :]


def reference_forward_matched(x_np, dft_fused_bf16, fb_f32):
    """Same math as the Pallas pipeline with the same bf16 operands (f64 accumulation):
    isolates the kernel implementation from the (intended) bf16 quantization."""
    x32 = x_np.astype(np.float32)
    xp = x32[:, 1:] - np.float32(PREEMPH) * x32[:, :-1]       # matches the jnp f32 path
    pad = N_FFT // 2
    xpad = np.pad(xp, ((0, 0), (pad, pad)), mode="reflect")
    n_frames = 1 + (xpad.shape[1] - N_FFT) // HOP
    idx = np.arange(n_frames)[:, None] * HOP + np.arange(N_FFT)[None, :]
    frames = xpad[:, idx]                                     # f32
    frames_b = np.asarray(
        np.asarray(jnp.asarray(frames, dtype=jnp.bfloat16).astype(jnp.float32)),
        dtype=np.float64)
    dft64 = np.asarray(np.asarray(dft_fused_bf16.astype(jnp.float32)), dtype=np.float64)
    fb64 = np.asarray(np.asarray(fb_f32), dtype=np.float64)
    ri = frames_b @ dft64                                     # (B, F, 2*NB)
    re, im = ri[..., :NB], ri[..., NB:]
    power = re ** 2 + im ** 2
    mel = power @ fb64.T
    return np.log(np.maximum(mel, 1e-7)).transpose(0, 2, 1)[:, None, :, :]


# ------------------------------------ main ------------------------------------
if __name__ == "__main__":
    key = jax.random.PRNGKey(0)
    B, T = 2, 16000                              # 2 s of 8 kHz audio -> 250 STFT frames
    x = jax.random.normal(key, (B, T), dtype=jnp.float32)

    dft_fused, fb = build_constants()
    fwd = jax.jit(p_augment_mel_stft_forward)
    out = jax.block_until_ready(fwd(x, dft_fused, fb))

    n_frames = 1 + ((T - 1) + 2 * (N_FFT // 2) - N_FFT) // HOP   # 250
    assert out.shape == (B, 1, N_MELS, n_frames) and out.dtype == jnp.float32

    x_np = np.asarray(x)
    out_np = np.asarray(out)

    # (1) Strict check against a reference using the same bf16 operands: only the
    #     accumulation precision differs, so tight tolerances apply.
    ref_matched = reference_forward_matched(x_np, dft_fused, fb)
    np.testing.assert_allclose(out_np, ref_matched, rtol=5e-3, atol=5e-3)

    # (2) Sanity check against the ideal fp64 pipeline on bins with non-negligible
    #     mel energy (log of near-zero energies amplifies the ~1% relative error
    #     that bf16 DFT operands introduce, which is expected and acceptable).
    ref64 = reference_forward(x_np)
    energetic = ref64 > 3.0                      # mel energy > ~20
    max_err = float(np.max(np.abs(out_np - ref64)[energetic]))
    assert max_err < 5e-2, f"bf16 deviation on energetic bins too large: {max_err}"

    print("KERNEL_OK")
</pallas_src>

<mosaic_0001>
module attributes {stable_mosaic.version = 11 : i64} {
  func.func @mel_kernel(%arg0: i32, %arg1: i32, %arg2: memref<1x256x256xbf16, #tpu.memory_space<vmem>>, %arg3: memref<256x256xbf16, #tpu.memory_space<vmem>>, %arg4: memref<32x128xf32, #tpu.memory_space<vmem>>, %arg5: memref<1x32x256xf32, #tpu.memory_space<vmem>>) attributes {dimension_semantics = [#tpu.dimension_semantics<parallel>, #tpu.dimension_semantics<parallel>], iteration_bounds = array<i64: 2, 1>, scalar_prefetch = 0 : i64, scratch_operands = 0 : i64, tpu.core_type = #tpu.core_type<tc>, window_params = [{transform_indices = @transform_0, window_bounds = array<i64: 1, 256, 256>}, {pipeline_mode = #tpu.pipeline_mode<synchronous>, transform_indices = @transform_1, window_bounds = array<i64: 256, 256>}, {pipeline_mode = #tpu.pipeline_mode<synchronous>, transform_indices = @transform_2, window_bounds = array<i64: 32, 128>}, {transform_indices = @transform_3, window_bounds = array<i64: 1, 32, 256>}]} {
    %c0 = arith.constant 0 : index
    %c0_0 = arith.constant 0 : index
    %c0_1 = arith.constant 0 : index
    %0 = vector.load %arg2[%c0, %c0_0, %c0_1] : memref<1x256x256xbf16, #tpu.memory_space<vmem>>, vector<1x256x256xbf16>
    %1 = vector.shape_cast %0 : vector<1x256x256xbf16> to vector<256x256xbf16>
    %c0_2 = arith.constant 0 : index
    %c0_3 = arith.constant 0 : index
    %2 = vector.load %arg3[%c0_2, %c0_3] : memref<256x256xbf16, #tpu.memory_space<vmem>>, vector<256x256xbf16>
    %cst = arith.constant dense<0.000000e+00> : vector<256x256xf32>
    %3 = tpu.matmul %1, %2, %cst {dimension_numbers = #tpu.dot_dimension_numbers<[1], [0], [0], [1], [0, 0, 1, 1], [], []>} : vector<256x256xbf16>, vector<256x256xbf16>, vector<256x256xf32> -> vector<256x256xf32>
    %4 = vector.extract_strided_slice %3 {offsets = [0, 0], sizes = [256, 128], strides = [1, 1]} : vector<256x256xf32> to vector<256x128xf32>
    %5 = vector.extract_strided_slice %3 {offsets = [0, 128], sizes = [256, 128], strides = [1, 1]} : vector<256x256xf32> to vector<256x128xf32>
    %6 = arith.mulf %4, %4 : vector<256x128xf32>
    %7 = arith.mulf %5, %5 : vector<256x128xf32>
    %8 = arith.addf %6, %7 : vector<256x128xf32>
    %c0_4 = arith.constant 0 : index
    %c0_5 = arith.constant 0 : index
    %9 = vector.load %arg4[%c0_4, %c0_5] : memref<32x128xf32, #tpu.memory_space<vmem>>, vector<32x128xf32>
    %cst_6 = arith.constant dense<0.000000e+00> : vector<32x256xf32>
    %10 = tpu.matmul %9, %8, %cst_6 {dimension_numbers = #tpu.dot_dimension_numbers<[1], [1], [0], [0], [0, 0, 1, 0], [], []>} : vector<32x128xf32>, vector<256x128xf32>, vector<32x256xf32> -> vector<32x256xf32>
    %cst_7 = arith.constant 1.000000e-07 : f32
    %11 = vector.broadcast %cst_7 : f32 to vector<32x256xf32>
    %12 = arith.maximumf %10, %11 : vector<32x256xf32>
    %13 = math.log %12 : vector<32x256xf32>
    %c0_8 = arith.constant 0 : index
    %c0_9 = arith.constant 0 : index
    %c0_10 = arith.constant 0 : index
    %14 = vector.load %arg5[%c0_8, %c0_9, %c0_10] : memref<1x32x256xf32, #tpu.memory_space<vmem>>, vector<1x32x256xf32>
    %15 = vector.shape_cast %14 : vector<1x32x256xf32> to vector<32x256xf32>
    %16 = vector.shape_cast %13 : vector<32x256xf32> to vector<1x32x256xf32>
    tpu.vector_store %arg5[%c0_8, %c0_9, %c0_10], %16 {strides = array<i32>} : memref<1x32x256xf32, #tpu.memory_space<vmem>>, vector<1x32x256xf32>,
    return
  }
  func.func @transform_0(%arg0: i32, %arg1: i32) -> (i32, i32, i32) {
    %c0_i32 = arith.constant 0 : i32
    %c0_i32_0 = arith.constant 0 : i32
    return %arg0, %arg1, %c0_i32 : i32, i32, i32
  }
  func.func @transform_1(%arg0: i32, %arg1: i32) -> (i32, i32) {
    %c0_i32 = arith.constant 0 : i32
    %c0_i32_0 = arith.constant 0 : i32
    %c0_i32_1 = arith.constant 0 : i32
    return %c0_i32, %c0_i32_0 : i32, i32
  }
  func.func @transform_2(%arg0: i32, %arg1: i32) -> (i32, i32) {
    %c0_i32 = arith.constant 0 : i32
    %c0_i32_0 = arith.constant 0 : i32
    %c0_i32_1 = arith.constant 0 : i32
    return %c0_i32, %c0_i32_0 : i32, i32
  }
  func.func @transform_3(%arg0: i32, %arg1: i32) -> (i32, i32, i32) {
    %c0_i32 = arith.constant 0 : i32
    %c0_i32_0 = arith.constant 0 : i32
    return %arg0, %c0_i32, %arg1 : i32, i32, i32
  }
}

</mosaic_0001>

<bundles_post_ra>
// kernel: p_augment_mel_stft_forward.1
= control target key start
LH: loop header
LB: loop body
LE: loop exit
PB: predicated region body
PF: predicated region fallthrough
CT: control target
= control target key end

     0   :  { %s1430_s12 = smov 0   ;;  %s1432_s13 = smov 0   ;;  %s1685_s0 = inlined_call_operand.vmem [shape: bf16[2,256,256], index: 0, kind: input, shape index: {}]   ;;  %s1686_s1 = inlined_call_operand.vmem [shape: bf16[256,256], index: 1, kind: input, shape index: {}]   ;;  %s1687_s2 = inlined_call_operand.vmem [shape: f32[32,128], index: 2, kind: input, shape index: {}]   ;;  %s1688_s3 = inlined_call_operand.vmem [shape: f32[2,32,256], index: 3, kind: output, shape index: {}]  }
   0x1   :  { %s1434_s14 = smov 0  }
   0x2 LB: > { %s25_s15 = sadd.s32 1, %s1404_s13  ;;  %p1105_p0 = scmp.ge.s32.totalorder %s1408_s14, 1  ;;  %s1408_s14 = sphi %s1434_s14, %s13_s14   ;;  %s1404_s13 = sphi %s1432_s13, %s1690_s13   ;;  %s1400_s12 = sphi %s1430_s12, %s1689_s12  }
   0x3   : > { %p27_p1 = scmp.ge.s32.totalorder %s25_s15, 2  ;;  %p159_p2 = scmp.lt.s32.totalorder %s1408_s14, 3 }
   0x5   : > { %s1692_s15 = smov (%p27_p1, %s25_s15), 0  ;;  %p160_p3 = pnand %p1105_p0, %p159_p2 }
   0x6   : > { %v1274_v0 = vld [vmem:[%s1686_s1 + $0x4] ss:$8 sps:$4 sm:$0xff] (!%p160_p3)   ;;  %v1276_v1 = vld [vmem:[%s1686_s1] ss:$8 sps:$4 sm:$0xff] (!%p160_p3)   ;;  %v1277_v2 = vld [vmem:[%s1686_s1 + $0x14] ss:$8 sps:$4 sm:$0xff] (!%p160_p3)  }
   0x7   : > { %163 = sbr.rel (%p160_p3) target bundleno = 661 (0x295), region = 32  ;;  %597 = vmatprep.subr.bf16.mxu0 (!%p160_p3), %v1274_v0  ;;  %v1279_v3 = vld [vmem:[%s1686_s1 + $0x10] ss:$8 sps:$4 sm:$0xff] (!%p160_p3)   ;;  %v1280_v4 = vld [vmem:[%s1686_s1 + $0x24] ss:$8 sps:$4 sm:$0xff] (!%p160_p3)   ;;  %p193_p4 = scmp.lt.s32.totalorder (!%p160_p3), %s1400_s12, 1 }
   0x8   : > { %598 = vmatpush1.bf16.msra.mxu0 (!%p160_p3), %v1276_v1  ;;  %v1282_v5 = vld [vmem:[%s1686_s1 + $0x20] ss:$8 sps:$4 sm:$0xff] (!%p160_p3)   ;;  %v1283_v6 = vld [vmem:[%s1686_s1 + $0x34] ss:$8 sps:$4 sm:$0xff] (!%p160_p3)   ;;  %v1285_v7 = vld [vmem:[%s1686_s1 + $0x30] ss:$8 sps:$4 sm:$0xff] (!%p160_p3)  }
   0x9   : > { %599 = vmatprep.subr.bf16.mxu0 (!%p160_p3), %v1277_v2  ;;  %v1286_v8 = vld [vmem:[%s1686_s1 + $0x44] ss:$8 sps:$4 sm:$0xff] (!%p160_p3)   ;;  %v1288_v9 = vld [vmem:[%s1686_s1 + $0x40] ss:$8 sps:$4 sm:$0xff] (!%p160_p3)   ;;  %v1289_v10 = vld [vmem:[%s1686_s1 + $0x54] ss:$8 sps:$4 sm:$0xff] (!%p160_p3)  }
   0xa   : > { %v1291_v11 = vld [vmem:[%s1686_s1 + $0x50] ss:$8 sps:$4 sm:$0xff] (!%p160_p3)   ;;  %v1292_v12 = vld [vmem:[%s1686_s1 + $0x64] ss:$8 sps:$4 sm:$0xff] (!%p160_p3)   ;;  %v1294_v14 = vld [vmem:[%s1686_s1 + $0x60] ss:$8 sps:$4 sm:$0xff] (!%p160_p3)  }
   0xb   : > { %v1295_v15 = vld [vmem:[%s1686_s1 + $0x74] ss:$8 sps:$4 sm:$0xff] (!%p160_p3)   ;;  %v1297_v16 = vld [vmem:[%s1686_s1 + $0x70] ss:$8 sps:$4 sm:$0xff] (!%p160_p3)   ;;  %v1298_v17 = vld [vmem:[%s1686_s1 + $0x84] ss:$8 sps:$4 sm:$0xff] (!%p160_p3)  }
   0xc   : > { %600 = vmatpush1.bf16.msra.mxu0 (!%p160_p3), %v1279_v3  ;;  %v1300_v18 = vld [vmem:[%s1686_s1 + $0x80] ss:$8 sps:$4 sm:$0xff] (!%p160_p3)   ;;  %v1301_v19 = vld [vmem:[%s1686_s1 + $0x94] ss:$8 sps:$4 sm:$0xff] (!%p160_p3)   ;;  %v1303_v20 = vld [vmem:[%s1686_s1 + $0x90] ss:$8 sps:$4 sm:$0xff] (!%p160_p3)  }
   0xd   : > { %601 = vmatprep.subr.bf16.mxu0 (!%p160_p3), %v1280_v4  ;;  %v1304_v21 = vld [vmem:[%s1686_s1 + $0xa4] ss:$8 sps:$4 sm:$0xff] (!%p160_p3)   ;;  %v1306_v22 = vld [vmem:[%s1686_s1 + $0xa0] ss:$8 sps:$4 sm:$0xff] (!%p160_p3)   ;;  %v1307_v23 = vld [vmem:[%s1686_s1 + $0xb4] ss:$8 sps:$4 sm:$0xff] (!%p160_p3)  }
   0xe   : > { %s1694_s12 = smov (!%p193_p4, %s1400_s12), 1  ;;  %v1309_v24 = vld [vmem:[%s1686_s1 + $0xb0] ss:$8 sps:$4 sm:$0xff]   ;;  %v1310_v25 = vld [vmem:[%s1686_s1 + $0xc4] ss:$8 sps:$4 sm:$0xff]  }
   0xf   : > { %s1176_s11 = sshll.u32 %s1694_s12, 8  ;;  %v1312_v26 = vld [vmem:[%s1686_s1 + $0xc0] ss:$8 sps:$4 sm:$0xff]   ;;  %v1313_v27 = vld [vmem:[%s1686_s1 + $0xd4] ss:$8 sps:$4 sm:$0xff]   ;;  %s1177_s24 = sshll.u32 %s1694_s12, 6 }
  0x10   : > { %602 = vmatpush1.bf16.msra.mxu0 %v1282_v5  ;;  %s1490_s20 = scalar_lea.vmem %s1685_s0, %s1176_s11  ;;  %v1315_v28 = vld [vmem:[%s1686_s1 + $0xd0] ss:$8 sps:$4 sm:$0xff]   ;;  %v1316_v29 = vld [vmem:[%s1686_s1 + $0xe4] ss:$8 sps:$4 sm:$0xff]   ;;  %v1318_v30 = vld [vmem:[%s1686_s1 + $0xe0] ss:$8 sps:$4 sm:$0xff]   ;;  %s211_s27 = scalar_lea.vmem %s1688_s3, %s1177_s24 }
  0x11   : > { %603 = vmatprep.subr.bf16.mxu0 %v1283_v6  ;;  %v1324_v13 = vld [vmem:[%s1490_s20 + $0x4] ss:$8 sps:$4 sm:$0xff]   ;;  %v1319_v31 = vld [vmem:[%s1686_s1 + $0xf4] ss:$8 sps:$4 sm:$0xff]   ;;  %v1321_v32 = vld [vmem:[%s1686_s1 + $0xf0] ss:$8 sps:$4 sm:$0xff]  }
  0x12   : > { %629 = vmatprep.mubr.bf16.mxu0 %v1324_v13  ;;  %v1322_v33 = vld [vmem:[%s1490_s20] ss:$8 sps:$4 sm:$0xff]   ;;  %v1325_v34 = vld [vmem:[%s1490_s20 + $0x14] ss:$8 sps:$4 sm:$0xff]   ;;  %v1327_v35 = vld [vmem:[%s1490_s20 + $0x10] ss:$8 sps:$4 sm:$0xff]  }
  0x13   : > { %v1328_v36 = vld [vmem:[%s1490_s20 + $0x24] ss:$8 sps:$4 sm:$0xff]   ;;  %v1330_v37 = vld [vmem:[%s1490_s20 + $0x20] ss:$8 sps:$4 sm:$0xff]   ;;  %v1331_v38 = vld [vmem:[%s1490_s20 + $0x34] ss:$8 sps:$4 sm:$0xff]  }
  0x14   : > { %604 = vmatpush1.bf16.msra.mxu0 %v1285_v7  ;;  %v1333_v39 = vld [vmem:[%s1490_s20 + $0x30] ss:$8 sps:$4 sm:$0xff]   ;;  %v1334_v40 = vld [vmem:[%s1490_s20 + $0x44] ss:$8 sps:$4 sm:$0xff]   ;;  %v1336_v41 = vld [vmem:[%s1490_s20 + $0x40] ss:$8 sps:$4 sm:$0xff]  }
  0x15   : > { %605 = vmatprep.subr.bf16.mxu0 %v1286_v8  ;;  %v1337_v42 = vld [vmem:[%s1490_s20 + $0x54] ss:$8 sps:$4 sm:$0xff]   ;;  %v1339_v43 = vld [vmem:[%s1490_s20 + $0x50] ss:$8 sps:$4 sm:$0xff]   ;;  %v1340_v44 = vld [vmem:[%s1490_s20 + $0x64] ss:$8 sps:$4 sm:$0xff]  }
  0x16   : > { %v1342_v45 = vld [vmem:[%s1490_s20 + $0x60] ss:$8 sps:$4 sm:$0xff]   ;;  %v1343_v46 = vld [vmem:[%s1490_s20 + $0x74] ss:$8 sps:$4 sm:$0xff]   ;;  %v1345_v47 = vld [vmem:[%s1490_s20 + $0x70] ss:$8 sps:$4 sm:$0xff]  }
  0x17   : > { %v1346_v48 = vld [vmem:[%s1490_s20 + $0x84] ss:$8 sps:$4 sm:$0xff]   ;;  %v1348_v49 = vld [vmem:[%s1490_s20 + $0x80] ss:$8 sps:$4 sm:$0xff]   ;;  %v1349_v50 = vld [vmem:[%s1490_s20 + $0x94] ss:$8 sps:$4 sm:$0xff]  }
  0x18   : > { %606 = vmatpush1.bf16.msra.mxu0 %v1288_v9  ;;  %v1351_v51 = vld [vmem:[%s1490_s20 + $0x90] ss:$8 sps:$4 sm:$0xff]   ;;  %v1352_v52 = vld [vmem:[%s1490_s20 + $0xa4] ss:$8 sps:$4 sm:$0xff]   ;;  %v1354_v53 = vld [vmem:[%s1490_s20 + $0xa0] ss:$8 sps:$4 sm:$0xff]  }
  0x19   : > { %607 = vmatprep.subr.bf16.mxu0 %v1289_v10  ;;  %v1355_v54 = vld [vmem:[%s1490_s20 + $0xb4] ss:$8 sps:$4 sm:$0xff]   ;;  %v1357_v55 = vld [vmem:[%s1490_s20 + $0xb0] ss:$8 sps:$4 sm:$0xff]   ;;  %v1358_v56 = vld [vmem:[%s1490_s20 + $0xc4] ss:$8 sps:$4 sm:$0xff]  }
  0x1a   : > { %v1360_v57 = vld [vmem:[%s1490_s20 + $0xc0] ss:$8 sps:$4 sm:$0xff]   ;;  %v1361_v58 = vld [vmem:[%s1490_s20 + $0xd4] ss:$8 sps:$4 sm:$0xff]   ;;  %v1363_v59 = vld [vmem:[%s1490_s20 + $0xd0] ss:$8 sps:$4 sm:$0xff]  }
  0x1b   : > { %v1364_v60 = vld [vmem:[%s1490_s20 + $0xe4] ss:$8 sps:$4 sm:$0xff]   ;;  %v1366_v61 = vld [vmem:[%s1490_s20 + $0xe0] ss:$8 sps:$4 sm:$0xff]   ;;  %v1367_v62 = vld [vmem:[%s1490_s20 + $0xf4] ss:$8 sps:$4 sm:$0xff]  }
  0x1c   : > { %608 = vmatpush1.bf16.msra.mxu0 %v1291_v11  ;;  %v1369_v63 = vld [vmem:[%s1490_s20 + $0xf0] ss:$8 sps:$4 sm:$0xff]   ;;  %v1587_v7 = vld [vmem:[%s1687_s2] sm:$0xff] }
  0x1d   : > { %609 = vmatprep.subr.bf16.mxu0 %v1292_v12  ;;  %1210 = vmatprep.mubr.f32.mxu1 %v1587_v7 }
  0x20   : > { %610 = vmatpush1.bf16.msra.mxu0 %v1294_v14 }
  0x21   : > { %611 = vmatprep.subr.bf16.mxu0 %v1295_v15 }
  0x24   : > { %612 = vmatpush1.bf16.msra.mxu0 %v1297_v16 }
  0x25   : > { %613 = vmatprep.subr.bf16.mxu0 %v1298_v17 }
  0x28   : > { %614 = vmatpush1.bf16.msra.mxu0 %v1300_v18 }
  0x29   : > { %615 = vmatprep.subr.bf16.mxu0 %v1301_v19 }
  0x2c   : > { %616 = vmatpush1.bf16.msra.mxu0 %v1303_v20 }
  0x2d   : > { %617 = vmatprep.subr.bf16.mxu0 %v1304_v21 }
  0x30   : > { %618 = vmatpush1.bf16.msra.mxu0 %v1306_v22 }
  0x31   : > { %619 = vmatprep.subr.bf16.mxu0 %v1307_v23 }
  0x34   : > { %620 = vmatpush1.bf16.msra.mxu0 %v1309_v24 }
  0x35   : > { %621 = vmatprep.subr.bf16.mxu0 %v1310_v25 }
  0x38   : > { %622 = vmatpush1.bf16.msra.mxu0 %v1312_v26 }
  0x39   : > { %623 = vmatprep.subr.bf16.mxu0 %v1313_v27 }
  0x3c   : > { %624 = vmatpush1.bf16.msra.mxu0 %v1315_v28 }
  0x3d   : > { %625 = vmatprep.subr.bf16.mxu0 %v1316_v29 }
  0x40   : > { %626 = vmatpush1.bf16.msra.mxu0 %v1318_v30 }
  0x41   : > { %627 = vmatprep.subr.bf16.mxu0 %v1319_v31 }
  0x44   : > { %628 = vmatpush1.bf16.msra.mxu0 %v1321_v32 }
  0x47   : > { %630 = vmatmul.mubr.bf16.vlgmr.msra.gmra.mrb[0].mxu0 %v1322_v33 }
  0x48   : > { %639 = vmatprep.mubr.bf16.mxu0 %v1325_v34 }
  0x4f   : > { %640 = vmatmul.mubr.bf16.gmra.mrb[4].mxu0 %v1327_v35 }
  0x50   : > { %649 = vmatprep.mubr.bf16.mxu0 %v1328_v36 }
  0x57   : > { %650 = vmatmul.mubr.bf16.gmra.mrb[8].mxu0 %v1330_v37 }
  0x58   : > { %659 = vmatprep.mubr.bf16.mxu0 %v1331_v38 }
  0x5f   : > { %660 = vmatmul.mubr.bf16.gmra.mrb[12].mxu0 %v1333_v39 }
  0x60   : > { %669 = vmatprep.mubr.bf16.mxu0 %v1334_v40 }
  0x67   : > { %670 = vmatmul.mubr.bf16.gmra.mrb[16].mxu0 %v1336_v41 }
  0x68   : > { %679 = vmatprep.mubr.bf16.mxu0 %v1337_v42 }
  0x6f   : > { %680 = vmatmul.mubr.bf16.gmra.mrb[20].mxu0 %v1339_v43 }
  0x70   : > { %689 = vmatprep.mubr.bf16.mxu0 %v1340_v44 }
  0x77   : > { %690 = vmatmul.mubr.bf16.gmra.mrb[24].mxu0 %v1342_v45 }
  0x78   : > { %699 = vmatprep.mubr.bf16.mxu0 %v1343_v46 }
  0x7f   : > { %700 = vmatmul.mubr.bf16.gmra.mrb[28].mxu0 %v1345_v47 }
  0x80   : > { %709 = vmatprep.mubr.bf16.mxu0 %v1346_v48 }
  0x87   : > { %710 = vmatmul.mubr.bf16.gmra.mrb[32].mxu0 %v1348_v49 }
  0x88   : > { %719 = vmatprep.mubr.bf16.mxu0 %v1349_v50 }
  0x8f   : > { %720 = vmatmul.mubr.bf16.gmra.mrb[36].mxu0 %v1351_v51 }
  0x90   : > { %729 = vmatprep.mubr.bf16.mxu0 %v1352_v52 }
  0x97   : > { %730 = vmatmul.mubr.bf16.gmra.mrb[40].mxu0 %v1354_v53 }
  0x98   : > { %739 = vmatprep.mubr.bf16.mxu0 %v1355_v54 }
  0x9f   : > { %740 = vmatmul.mubr.bf16.gmra.mrb[44].mxu0 %v1357_v55 }
  0xa0   : > { %749 = vmatprep.mubr.bf16.mxu0 %v1358_v56 }
  0xa7   : > { %750 = vmatmul.mubr.bf16.gmra.mrb[48].mxu0 %v1360_v57 }
  0xa8   : > { %759 = vmatprep.mubr.bf16.mxu0 %v1361_v58 }
  0xaf   : > { %760 = vmatmul.mubr.bf16.gmra.mrb[52].mxu0 %v1363_v59 }
  0xb0   : > { %769 = vmatprep.mubr.bf16.mxu0 %v1364_v60 }
  0xb7   : > { %770 = vmatmul.mubr.bf16.gmra.mrb[56].mxu0 %v1366_v61 }
  0xb8   : > { %779 = vmatprep.mubr.bf16.mxu0 %v1367_v62 }
  0xbf   : > { %780 = vmatmul.mubr.bf16.gmra.mrb[60].mxu0 %v1369_v63 }
 0x11a   : > { %v631_v0 = vpop.f32.mrb[0].mxu0 }
 0x11b   : > { %v790_v1 = vmul.f32 %v631_v0, %v631_v0  ;;  %v633_v2 = vpop.f32.mrb[1].mxu0 }
 0x11c   : > { %v822_v3 = vmul.f32 %v633_v2, %v633_v2  ;;  %v635_v4 = vpop.f32.mrb[2].mxu0 }
 0x11d   : > { %v791_v5 = vmul.f32 %v635_v4, %v635_v4  ;;  %v637_v6 = vpop.f32.mrb[3].mxu0 }
 0x11e   : > { %v1589_v8 = vadd.f32 %v822_v3, %v790_v1  ;;  %v823_v9 = vmul.f32 %v637_v6, %v637_v6 }
 0x120   : > { %v1592_v10 = vadd.f32 %v823_v9, %v791_v5 }
 0x122   : > { %v641_v11 = vpop.f32.mrb[4].mxu0  ;;  %v1220_v12 = vpack.c.bf16 %v1592_v10, %v1589_v8 }
 0x123   : > { %v792_v13 = vmul.f32 %v641_v11, %v641_v11  ;;  %v643_v14 = vpop.f32.mrb[5].mxu0 }
 0x124   : > { %v824_v15 = vmul.f32 %v643_v14, %v643_v14  ;;  %v645_v16 = vpop.f32.mrb[6].mxu0 }
 0x125   : > { %v793_v17 = vmul.f32 %v645_v16, %v645_v16  ;;  %v647_v18 = vpop.f32.mrb[7].mxu0 }
 0x126   : > { %v1596_v19 = vadd.f32 %v824_v15, %v792_v13  ;;  %v825_v20 = vmul.f32 %v647_v18, %v647_v18 }
 0x128   : > { %v1598_v21 = vadd.f32 %v825_v20, %v793_v17 }
 0x12a   : > { %v651_v22 = vpop.f32.mrb[8].mxu0  ;;  %v1224_v23 = vpack.c.bf16 %v1598_v21, %v1596_v19 }
 0x12b   : > { %v794_v24 = vmul.f32 %v651_v22, %v651_v22  ;;  %v653_v25 = vpop.f32.mrb[9].mxu0 }
 0x12c   : > { %v826_v26 = vmul.f32 %v653_v25, %v653_v25  ;;  %v655_v27 = vpop.f32.mrb[10].mxu0 }
 0x12d   : > { %v795_v28 = vmul.f32 %v655_v27, %v655_v27  ;;  %v657_v29 = vpop.f32.mrb[11].mxu0 }
 0x12e   : > { %v1602_v30 = vadd.f32 %v826_v26, %v794_v24  ;;  %v827_v31 = vmul.f32 %v657_v29, %v657_v29 }
 0x130   : > { %v1604_v32 = vadd.f32 %v827_v31, %v795_v28 }
 0x132   : > { %v661_v33 = vpop.f32.mrb[12].mxu0  ;;  %v1228_v34 = vpack.c.bf16 %v1604_v32, %v1602_v30 }
 0x133   : > { %v796_v35 = vmul.f32 %v661_v33, %v661_v33  ;;  %v663_v36 = vpop.f32.mrb[13].mxu0 }
 0x134   : > { %v828_v37 = vmul.f32 %v663_v36, %v663_v36  ;;  %v665_v38 = vpop.f32.mrb[14].mxu0 }
 0x135   : > { %v797_v39 = vmul.f32 %v665_v38, %v665_v38  ;;  %v667_v40 = vpop.f32.mrb[15].mxu0 }
 0x136   : > { %v1608_v41 = vadd.f32 %v828_v37, %v796_v35  ;;  %v829_v42 = vmul.f32 %v667_v40, %v667_v40 }
 0x138   : > { %v1610_v43 = vadd.f32 %v829_v42, %v797_v39 }
 0x13a   : > { %v671_v44 = vpop.f32.mrb[16].mxu0  ;;  %v1232_v45 = vpack.c.bf16 %v1610_v43, %v1608_v41 }
 0x13b   : > { %v798_v46 = vmul.f32 %v671_v44, %v671_v44  ;;  %v673_v47 = vpop.f32.mrb[17].mxu0 }
 0x13c   : > { %v830_v48 = vmul.f32 %v673_v47, %v673_v47  ;;  %v675_v49 = vpop.f32.mrb[18].mxu0 }
 0x13d   : > { %v799_v50 = vmul.f32 %v675_v49, %v675_v49  ;;  %v677_v51 = vpop.f32.mrb[19].mxu0 }
 0x13e   : > { %v1614_v52 = vadd.f32 %v830_v48, %v798_v46  ;;  %v831_v53 = vmul.f32 %v677_v51, %v677_v51 }
 0x140   : > { %v1616_v54 = vadd.f32 %v831_v53, %v799_v50 }
 0x142   : > { %v681_v55 = vpop.f32.mrb[20].mxu0  ;;  %v1236_v56 = vpack.c.bf16 %v1616_v54, %v1614_v52 }
 0x143   : > { %v800_v57 = vmul.f32 %v681_v55, %v681_v55  ;;  %v683_v58 = vpop.f32.mrb[21].mxu0 }
 0x144   : > { %v832_v59 = vmul.f32 %v683_v58, %v683_v58  ;;  %v685_v60 = vpop.f32.mrb[22].mxu0 }
 0x145   : > { %v801_v61 = vmul.f32 %v685_v60, %v685_v60  ;;  %v687_v62 = vpop.f32.mrb[23].mxu0 }
 0x146   : > { %v1620_v63 = vadd.f32 %v832_v59, %v800_v57  ;;  %v833_v0 = vmul.f32 %v687_v62, %v687_v62 }
 0x148   : > { %v1622_v1 = vadd.f32 %v833_v0, %v801_v61 }
 0x14a   : > { %v691_v2 = vpop.f32.mrb[24].mxu0  ;;  %v1240_v3 = vpack.c.bf16 %v1622_v1, %v1620_v63 }
 0x14b   : > { %v802_v4 = vmul.f32 %v691_v2, %v691_v2  ;;  %v693_v5 = vpop.f32.mrb[25].mxu0 }
 0x14c   : > { %v834_v6 = vmul.f32 %v693_v5, %v693_v5  ;;  %v695_v9 = vpop.f32.mrb[26].mxu0 }
 0x14d   : > { %v803_v11 = vmul.f32 %v695_v9, %v695_v9  ;;  %v697_v13 = vpop.f32.mrb[27].mxu0 }
 0x14e   : > { %v1626_v14 = vadd.f32 %v834_v6, %v802_v4  ;;  %v835_v15 = vmul.f32 %v697_v13, %v697_v13 }
 0x150   : > { %v1628_v16 = vadd.f32 %v835_v15, %v803_v11 }
 0x152   : > { %v701_v17 = vpop.f32.mrb[28].mxu0  ;;  %v1244_v18 = vpack.c.bf16 %v1628_v16, %v1626_v14  ;;  %v888_v14 = vld [vmem:[%s1687_s2 + $0x10] sm:$0xff]  ;;  %v889_v16 = vld [vmem:[%s1687_s2 + $0x18] sm:$0xff] }
 0x153   : > { %v804_v20 = vmul.f32 %v701_v17, %v701_v17  ;;  %v703_v22 = vpop.f32.mrb[29].mxu0 }
 0x154   : > { %v836_v24 = vmul.f32 %v703_v22, %v703_v22  ;;  %v705_v25 = vpop.f32.mrb[30].mxu0 }
 0x155   : > { %v805_v26 = vmul.f32 %v705_v25, %v705_v25  ;;  %v707_v27 = vpop.f32.mrb[31].mxu0 }
 0x156   : > { %v1632_v28 = vadd.f32 %v836_v24, %v804_v20  ;;  %v837_v29 = vmul.f32 %v707_v27, %v707_v27 }
 0x158   : > { %v1634_v31 = vadd.f32 %v837_v29, %v805_v26 }
 0x15a   : > { %v711_v33 = vpop.f32.mrb[32].mxu0  ;;  %v1248_v35 = vpack.c.bf16 %v1634_v31, %v1632_v28 }
 0x15b   : > { %v806_v36 = vmul.f32 %v711_v33, %v711_v33  ;;  %v713_v37 = vpop.f32.mrb[33].mxu0 }
 0x15c   : > { %v838_v38 = vmul.f32 %v713_v37, %v713_v37  ;;  %v715_v39 = vpop.f32.mrb[34].mxu0 }
 0x15d   : > { %v807_v40 = vmul.f32 %v715_v39, %v715_v39  ;;  %v717_v42 = vpop.f32.mrb[35].mxu0 }
 0x15e   : > { %v839_v44 = vmul.f32 %v717_v42, %v717_v42  ;;  %v870_v46 = vadd.f32 %v838_v38, %v806_v36 }
 0x160   : > { %v871_v47 = vadd.f32 %v839_v44, %v807_v40 }
 0x162   : > { %v721_v48 = vpop.f32.mrb[36].mxu0  ;;  %v1218_v49 = vpack.c.bf16 %v871_v47, %v870_v46 }
 0x163   : > { %v808_v50 = vmul.f32 %v721_v48, %v721_v48  ;;  %v723_v51 = vpop.f32.mrb[37].mxu0 }
 0x164   : > { %v840_v53 = vmul.f32 %v723_v51, %v723_v51  ;;  %v725_v55 = vpop.f32.mrb[38].mxu0  ;;  %1219 = vmatprep.subr.bf16.mxu1 %v1218_v49 }
 0x165   : > { %v809_v57 = vmul.f32 %v725_v55, %v725_v55  ;;  %v727_v58 = vpop.f32.mrb[39].mxu0  ;;  %1221 = vmatpush3.bf16.xpose.msra.mxu1 %v1220_v12 }
 0x166   : > { %v872_v59 = vadd.f32 %v840_v53, %v808_v50  ;;  %v841_v60 = vmul.f32 %v727_v58, %v727_v58 }
 0x168   : > { %v873_v61 = vadd.f32 %v841_v60, %v809_v57 }
 0x16a   : > { %v731_v62 = vpop.f32.mrb[40].mxu0  ;;  %v1222_v0 = vpack.c.bf16 %v873_v61, %v872_v59 }
 0x16b   : > { %v810_v2 = vmul.f32 %v731_v62, %v731_v62  ;;  %v733_v4 = vpop.f32.mrb[41].mxu0 }
 0x16c   : > { %v842_v5 = vmul.f32 %v733_v4, %v733_v4  ;;  %v735_v6 = vpop.f32.mrb[42].mxu0  ;;  %1223 = vmatprep.subr.bf16.mxu1 %v1222_v0 }
 0x16d   : > { %v811_v9 = vmul.f32 %v735_v6, %v735_v6  ;;  %v737_v11 = vpop.f32.mrb[43].mxu0  ;;  %1225 = vmatpush3.bf16.xpose.msra.mxu1 %v1224_v23 }
 0x16e   : > { %v874_v13 = vadd.f32 %v842_v5, %v810_v2  ;;  %v843_v15 = vmul.f32 %v737_v11, %v737_v11 }
 0x170   : > { %v875_v8 = vadd.f32 %v843_v15, %v811_v9 }
 0x172   : > { %v741_v10 = vpop.f32.mrb[44].mxu0  ;;  %v1226_v12 = vpack.c.bf16 %v875_v8, %v874_v13 }
 0x173   : > { %v812_v17 = vmul.f32 %v741_v10, %v741_v10  ;;  %v743_v20 = vpop.f32.mrb[45].mxu0 }
 0x174   : > { %v844_v22 = vmul.f32 %v743_v20, %v743_v20  ;;  %v745_v24 = vpop.f32.mrb[46].mxu0  ;;  %1227 = vmatprep.subr.bf16.mxu1 %v1226_v12 }
 0x175   : > { %v813_v25 = vmul.f32 %v745_v24, %v745_v24  ;;  %v747_v26 = vpop.f32.mrb[47].mxu0  ;;  %1229 = vmatpush3.bf16.xpose.msra.mxu1 %v1228_v34 }
 0x176   : > { %v876_v27 = vadd.f32 %v844_v22, %v812_v17  ;;  %v845_v29 = vmul.f32 %v747_v26, %v747_v26 }
 0x178   : > { %v877_v19 = vadd.f32 %v845_v29, %v813_v25 }
 0x17a   : > { %v751_v21 = vpop.f32.mrb[48].mxu0  ;;  %v1230_v23 = vpack.c.bf16 %v877_v19, %v876_v27 }
 0x17b   : > { %v814_v33 = vmul.f32 %v751_v21, %v751_v21  ;;  %v753_v36 = vpop.f32.mrb[49].mxu0 }
 0x17c   : > { %v846_v37 = vmul.f32 %v753_v36, %v753_v36  ;;  %v755_v38 = vpop.f32.mrb[50].mxu0  ;;  %1231 = vmatprep.subr.bf16.mxu1 %v1230_v23 }
 0x17d   : > { %v815_v39 = vmul.f32 %v755_v38, %v755_v38  ;;  %v757_v40 = vpop.f32.mrb[51].mxu0  ;;  %1233 = vmatpush3.bf16.xpose.msra.mxu1 %v1232_v45 }
 0x17e   : > { %v878_v42 = vadd.f32 %v846_v37, %v814_v33  ;;  %v847_v44 = vmul.f32 %v757_v40, %v757_v40 }
 0x180   : > { %v879_v30 = vadd.f32 %v847_v44, %v815_v39 }
 0x182   : > { %v761_v32 = vpop.f32.mrb[52].mxu0  ;;  %v1234_v34 = vpack.c.bf16 %v879_v30, %v878_v42 }
 0x183   : > { %v816_v46 = vmul.f32 %v761_v32, %v761_v32  ;;  %v763_v47 = vpop.f32.mrb[53].mxu0 }
 0x184   : > { %v848_v48 = vmul.f32 %v763_v47, %v763_v47  ;;  %v765_v49 = vpop.f32.mrb[54].mxu0  ;;  %1235 = vmatprep.subr.bf16.mxu1 %v1234_v34 }
 0x185   : > { %v817_v50 = vmul.f32 %v765_v49, %v765_v49  ;;  %v767_v51 = vpop.f32.mrb[55].mxu0  ;;  %1237 = vmatpush3.bf16.xpose.msra.mxu1 %v1236_v56 }
 0x186   : > { %v880_v53 = vadd.f32 %v848_v48, %v816_v46  ;;  %v849_v55 = vmul.f32 %v767_v51, %v767_v51 }
 0x188   : > { %v881_v41 = vadd.f32 %v849_v55, %v817_v50 }
 0x18a   : > { %v771_v43 = vpop.f32.mrb[56].mxu0  ;;  %v1238_v45 = vpack.c.bf16 %v881_v41, %v880_v53 }
 0x18b   : > { %v818_v57 = vmul.f32 %v771_v43, %v771_v43  ;;  %v773_v58 = vpop.f32.mrb[57].mxu0 }
 0x18c   : > { %v850_v59 = vmul.f32 %v773_v58, %v773_v58  ;;  %v775_v60 = vpop.f32.mrb[58].mxu0  ;;  %1239 = vmatprep.subr.bf16.mxu1 %v1238_v45 }
 0x18d   : > { %v819_v61 = vmul.f32 %v775_v60, %v775_v60  ;;  %v777_v62 = vpop.f32.mrb[59].mxu0  ;;  %1241 = vmatpush3.bf16.xpose.msra.mxu1 %v1240_v3  ;;  %v887_v3 = vld [vmem:[%s1687_s2 + $0x8] sm:$0xff] }
 0x18e   : > { %v882_v0 = vadd.f32 %v850_v59, %v818_v57  ;;  %v851_v2 = vmul.f32 %v777_v62, %v777_v62 }
 0x190   : > { %v883_v52 = vadd.f32 %v851_v2, %v819_v61 }
 0x192   : > { %v781_v54 = vpop.f32.mrb[60].mxu0  ;;  %v1242_v56 = vpack.c.bf16 %v883_v52, %v882_v0 }
 0x193   : > { %v820_v4 = vmul.f32 %v781_v54, %v781_v54  ;;  %v783_v5 = vpop.f32.mrb[61].mxu0 }
 0x194   : > { %v852_v6 = vmul.f32 %v783_v5, %v783_v5  ;;  %v785_v9 = vpop.f32.mrb[62].mxu0  ;;  %1243 = vmatprep.subr.bf16.mxu1 %v1242_v56 }
 0x195   : > { %v821_v11 = vmul.f32 %v785_v9, %v785_v9  ;;  %v787_v13 = vpop.f32.mrb[63].mxu0  ;;  %1245 = vmatpush3.bf16.xpose.msra.mxu1 %v1244_v18 }
 0x196   : > { %v884_v15 = vadd.f32 %v852_v6, %v820_v4  ;;  %v853_v8 = vmul.f32 %v787_v13, %v787_v13 }
 0x198   : > { %v885_v63 = vadd.f32 %v853_v8, %v821_v11 }
 0x19a   : > { %v1246_v1 = vpack.c.bf16 %v885_v63, %v884_v15 }
 0x19c   : > { %1247 = vmatprep.subr.bf16.mxu1 %v1246_v1 }
 0x19d   : > { %1249 = vmatpush3.bf16.xpose.msra.mxu1 %v1248_v35 }
 0x1a4   : > { %1211 = vmatmul.mubr.f32.vlgmr.msra.gmra.mrb[0].mxu1 %v1587_v7 }
 0x1a5   : > { %1212 = vmatprep.mubr.f32.mxu1 %v887_v3 }
 0x1a8   : > { %1213 = vmatmul.mubr.f32.gmra.mrb[2].mxu1 %v887_v3 }
 0x1a9   : > { %1214 = vmatprep.mubr.f32.mxu1 %v888_v14 }
 0x1ac   : > { %1215 = vmatmul.mubr.f32.gmra.mrb[4].mxu1 %v888_v14 }
 0x1ad   : > { %1216 = vmatprep.mubr.f32.mxu1 %v889_v16 }
 0x1b0   : > { %1217 = vmatmul.mubr.f32.gmra.mrb[6].mxu1 %v889_v16 }
 0x277   : > { %v956_v18 = vpop.f32.mrb[0].mxu1 }
 0x278   : > { %v979_v28 = vmax.f32 %v956_v18, 1e-07  ;;  %v958_v31 = vpop.f32.mrb[1].mxu1 }
 0x279   : > { %v980_v35 = vmax.f32 %v958_v31, 1e-07 }
 0x27a   : > { %1370 = vlog2.f32 %v979_v28 }
 0x27b   : > { %1372 = vlog2.f32 %v980_v35  ;;  %v962_v7 = vpop.f32.mrb[2].mxu1 }
 0x27c   : > { %v981_v10 = vmax.f32 %v962_v7, 1e-07  ;;  %v964_v12 = vpop.f32.mrb[3].mxu1 }
 0x27d   : > { %v982_v17 = vmax.f32 %v964_v12, 1e-07 }
 0x27e   : > { %1374 = vlog2.f32 %v981_v10 }
 0x27f   : > { %1376 = vlog2.f32 %v982_v17  ;;  %v968_v20 = vpop.f32.mrb[4].mxu1 }
 0x280   : > { %v983_v22 = vmax.f32 %v968_v20, 1e-07  ;;  %v970_v24 = vpop.f32.mrb[5].mxu1 }
 0x281   : > { %v984_v25 = vmax.f32 %v970_v24, 1e-07 }
 0x282   : > { %1378 = vlog2.f32 %v983_v22 }
 0x283   : > { %1380 = vlog2.f32 %v984_v25  ;;  %v974_v26 = vpop.f32.mrb[6].mxu1 }
 0x284   : > { %v1371_v27 = vpop.eup %1370  ;;  %v985_v29 = vmax.f32 %v974_v26, 1e-07  ;;  %v976_v19 = vpop.f32.mrb[7].mxu1 }
 0x285   : > { %v1373_v21 = vpop.eup %1372  ;;  %v988_v23 = vmul.f32 0.6931472, %v1371_v27  ;;  %v986_v33 = vmax.f32 %v976_v19, 1e-07 }
 0x286   : > { %v990_v36 = vmul.f32 0.6931472, %v1373_v21  ;;  %1382 = vlog2.f32 %v985_v29 }
 0x287   : > { %1003 = vst [vmem:[%s211_s27] sm:$0xff] %v988_v23  ;;  %1384 = vlog2.f32 %v986_v33 }
 0x288   : > { %v1375_v37 = vpop.eup %1374  ;;  %1004 = vst [vmem:[%s211_s27 + $0x8] sm:$0xff] %v990_v36 }
 0x289   : > { %v1377_v38 = vpop.eup %1376  ;;  %v992_v39 = vmul.f32 0.6931472, %v1375_v37 }
 0x28a   : > { %v994_v40 = vmul.f32 0.6931472, %v1377_v38 }
 0x28b   : > { %1005 = vst [vmem:[%s211_s27 + $0x10] sm:$0xff] %v992_v39 }
 0x28c   : > { %v1379_v42 = vpop.eup %1378  ;;  %1006 = vst [vmem:[%s211_s27 + $0x18] sm:$0xff] %v994_v40 }
 0x28d   : > { %v1381_v44 = vpop.eup %1380  ;;  %v996_v30 = vmul.f32 0.6931472, %v1379_v42 }
 0x28e   : > { %v998_v32 = vmul.f32 0.6931472, %v1381_v44 }
 0x28f   : > { %1007 = vst [vmem:[%s211_s27 + $0x20] sm:$0xff] %v996_v30 }
 0x290   : > { %v1383_v34 = vpop.eup %1382  ;;  %1008 = vst [vmem:[%s211_s27 + $0x28] sm:$0xff] %v998_v32 }
 0x291   : > { %v1385_v46 = vpop.eup %1384  ;;  %v1000_v47 = vmul.f32 0.6931472, %v1383_v34 }
 0x292   : > { %v1002_v48 = vmul.f32 0.6931472, %v1385_v46 }
 0x293   : > { %1009 = vst [vmem:[%s211_s27 + $0x30] sm:$0xff] %v1000_v47 }
 0x294   : > { %1010 = vst [vmem:[%s211_s27 + $0x38] sm:$0xff] %v1002_v48 }
 0x295 PF: > { %s13_s14 = sadd.s32 1, %s1408_s14   ;;  %s1689_s12 = smov %s1404_s13 }
 0x296   : > { %p10_p5 = scmp.ge.s32.totalorder %s13_s14, 4   ;;  %s1690_s13 = smov %s1692_s15 }
 0x298   :  { %12 = sbr.rel (!%p10_p5) target bundleno = 2 (0x2), region = 62 }

</bundles_post_ra>
